<compile_context>
chip_gen: v6e
topology: v6e:2x2x1
jax: 0.10.0
libtpu: 0.0.40
codegen_flags: <defaults>
</compile_context>

<pallas_src>
import jax
import jax.numpy as jnp
from jax.experimental import pallas as pl
from jax.experimental.pallas import tpu as pltpu


def _round_up(x, m):
    return (x + m - 1) // m * m


def _vmem_capacity_bytes():
    try:
        info = pltpu.get_tpu_info()
        cap = getattr(info, "vmem_capacity_bytes", None)
        if cap:
            return int(cap)
    except Exception:
        pass
    return 64 * 1024 * 1024  # conservative: v7x per-TensorCore VMEM


def _pick_tile_q(n_q, desired):
    desired = max(8, _round_up(desired, 8))
    if n_q <= 8:
        return n_q  # block == full dim (legal for any size)
    if n_q <= desired:
        # Split into >= 2 row tiles so both v7x TensorCores get work.
        return min(_round_up((n_q + 1) // 2, 8), _round_up(n_q, 8))
    return desired


def nw_kernel_regression(w, queries, keys, values, *, tile_q=256, tile_k=2048):
    """w: (1,), queries: (Nq,), keys/values: (Nq, Nk). Returns (Nq,) float32."""
    n_q, n_k = keys.shape
    assert queries.shape == (n_q,) and values.shape == (n_q, n_k)

    # ---- tile sizes ------------------------------------------------------
    tile_k = max(128, _round_up(tile_k, 128))
    tk = n_k if n_k <= tile_k else tile_k        # full key dim, or 128-lane tiles
    tq = _pick_tile_q(n_q, tile_q)

    # VMEM budget with headroom (v7x only has 64 MiB per TensorCore).
    vmem_limit = (_vmem_capacity_bytes() * 3) // 4
    kv_item = jnp.dtype(keys.dtype).itemsize + jnp.dtype(values.dtype).itemsize
    per_elem = 2 * kv_item + 3 * 4               # double-buffered K+V + ~3 f32 temps
    max_qk = max((vmem_limit // 2) // per_elem, 8 * 128)
    if n_q > 8 and tq * tk > max_qk:
        tq = max(8, ((max_qk // tk) // 8) * 8)

    n_qt = pl.cdiv(n_q, tq)
    n_kt = pl.cdiv(n_k, tk)
    ragged_k = (n_k % tk) != 0                   # static: garbage key cols may appear

    # Scalar-only fold: -((q-k)*w)^2/2 == c*(q-k)^2 with c = -w^2/2.
    c2 = (-0.5 * w.reshape(()).astype(jnp.float32) ** 2).reshape(1, 1)
    q2 = queries.reshape(n_q, 1)

    def kernel(c_ref, q_ref, k_ref, v_ref, o_ref, m_sc, l_sc, acc_sc):
        j = pl.program_id(1)

        @pl.when(j == 0)
        def _init():
            m_sc[...] = jnp.full_like(m_sc, -1e30)
            l_sc[...] = jnp.zeros_like(l_sc)
            acc_sc[...] = jnp.zeros_like(acc_sc)

        c = c_ref[...]                            # (1, 1) f32
        q = q_ref[...].astype(jnp.float32)        # (tq, 1)
        k = k_ref[...].astype(jnp.float32)        # (tq, tk)
        v = v_ref[...].astype(jnp.float32)        # (tq, tk)

        d = q - k
        s = d * d * c                             # (tq, tk), always <= 0 for real data

        if ragged_k:                              # mask out-of-range key columns
            col = jax.lax.broadcasted_iota(jnp.int32, s.shape, 1)
            valid = col < (n_k - j * tk)
            s = jnp.where(valid, s, jnp.float32(-1e30))

        m_prev = m_sc[...]
        m_cur = jnp.maximum(m_prev, jnp.max(s, axis=1, keepdims=True))   # (tq, 1)
        alpha = jnp.exp(m_prev - m_cur)
        p = jnp.exp(s - m_cur)                    # masked cols -> exactly 0
        pv = jnp.where(valid, p * v, jnp.float32(0.0)) if ragged_k else p * v
        l_sc[...] = alpha * l_sc[...] + jnp.sum(p, axis=1, keepdims=True)
        acc_sc[...] = alpha * acc_sc[...] + jnp.sum(pv, axis=1, keepdims=True)
        m_sc[...] = m_cur

        @pl.when(j == pl.num_programs(1) - 1)
        def _finalize():
            o_ref[...] = (acc_sc[...] / l_sc[...]).astype(o_ref.dtype)

    cost = pl.CostEstimate(
        flops=8 * n_q * n_k,
        transcendentals=n_q * n_k,
        bytes_accessed=n_q * n_k * kv_item + n_q * 8,
    )

    out = pl.pallas_call(
        kernel,
        out_shape=jax.ShapeDtypeStruct((n_q, 1), jnp.float32),
        grid_spec=pltpu.PrefetchScalarGridSpec(
            num_scalar_prefetch=0,
            grid=(n_qt, n_kt),
            in_specs=[
                pl.BlockSpec((1, 1), lambda i, j: (0, 0)),     # c = -w^2/2
                pl.BlockSpec((tq, 1), lambda i, j: (i, 0)),    # queries
                pl.BlockSpec((tq, tk), lambda i, j: (i, j)),   # keys
                pl.BlockSpec((tq, tk), lambda i, j: (i, j)),   # values
            ],
            out_specs=pl.BlockSpec((tq, 1), lambda i, j: (i, 0)),
            scratch_shapes=[pltpu.VMEM((tq, 1), jnp.float32)] * 3,
        ),
        compiler_params=pltpu.CompilerParams(
            dimension_semantics=("parallel", "arbitrary"),
            vmem_limit_bytes=int(vmem_limit),
        ),
        cost_estimate=cost,
    )(c2, q2, keys, values)
    return out[:, 0]


def _f(x):
    return 2.0 * jnp.sin(x) + x ** 0.8


def _ref(w, queries, keys, values):
    s = -((queries[:, None] - keys) * w.reshape(())) ** 2 / 2.0
    attn = jax.nn.softmax(s, axis=1)
    return jnp.sum(attn * values, axis=1)


if __name__ == "__main__":
    root = jax.random.PRNGKey(0)
    k_w, k_x, k_noise, k_big = jax.random.split(root, 4)

    # ---- Same setup as the PyTorch demo (n_train = n_test = 50). ----
    n_train = 50
    x_train = jnp.sort(jax.random.uniform(k_x, (n_train,)) * 5.0)
    y_train = _f(x_train) + 0.5 * jax.random.normal(k_noise, (n_train,))

    x_test = jnp.arange(0.0, 5.0, 0.1, dtype=jnp.float32)       # (50,)
    n_test = x_test.shape[0]
    keys = jnp.tile(x_train[None, :], (n_test, 1))              # (50, 50)
    values = jnp.tile(y_train[None, :], (n_test, 1))            # (50, 50)
    w = jax.random.uniform(k_w, (1,), dtype=jnp.float32)        # torch.rand((1,))

    out = jax.block_until_ready(nw_kernel_regression(w, x_test, keys, values))
    ref = _ref(w, x_test, keys, values)
    assert out.shape == (n_test,)
    assert jnp.allclose(out, ref, atol=1e-3, rtol=1e-3), \
        float(jnp.max(jnp.abs(out - ref)))

    # ---- Multi-tile grid: ragged query tail + tiled key axis with online
    #      softmax accumulation and ragged key-tail masking. ----
    n_q2, n_k2 = 200, 300
    qs2 = jax.random.uniform(jax.random.fold_in(k_big, 0), (n_q2,)) * 5.0
    ks2 = jax.random.uniform(jax.random.fold_in(k_big, 1), (n_q2, n_k2)) * 5.0
    vs2 = jax.random.normal(jax.random.fold_in(k_big, 2), (n_q2, n_k2))
    out2 = jax.block_until_ready(
        nw_kernel_regression(w, qs2, ks2, vs2, tile_q=64, tile_k=128))
    ref2 = _ref(w, qs2, ks2, vs2)
    assert out2.shape == (n_q2,)
    assert jnp.allclose(out2, ref2, atol=1e-3, rtol=1e-3), \
        float(jnp.max(jnp.abs(out2 - ref2)))

    print("KERNEL_OK")
</pallas_src>

<mosaic_0001>
module attributes {stable_mosaic.version = 11 : i64} {
  func.func @kernel(%arg0: i32, %arg1: i32, %arg2: memref<1x1xf32, #tpu.memory_space<vmem>>, %arg3: memref<32x1xf32, #tpu.memory_space<vmem>>, %arg4: memref<32x50xf32, #tpu.memory_space<vmem>>, %arg5: memref<32x50xf32, #tpu.memory_space<vmem>>, %arg6: memref<32x1xf32, #tpu.memory_space<vmem>>, %arg7: memref<32x1xf32, #tpu.memory_space<vmem>>, %arg8: memref<32x1xf32, #tpu.memory_space<vmem>>, %arg9: memref<32x1xf32, #tpu.memory_space<vmem>>) attributes {dimension_semantics = [#tpu.dimension_semantics<parallel>, #tpu.dimension_semantics<arbitrary>], iteration_bounds = array<i64: 2, 1>, scalar_prefetch = 0 : i64, scratch_operands = 3 : i64, tpu.core_type = #tpu.core_type<tc>, window_params = [{pipeline_mode = #tpu.pipeline_mode<synchronous>, transform_indices = @transform_0, window_bounds = array<i64: 1, 1>}, {transform_indices = @transform_1, window_bounds = array<i64: 32, 1>}, {transform_indices = @transform_2, window_bounds = array<i64: 32, 50>}, {transform_indices = @transform_3, window_bounds = array<i64: 32, 50>}, {transform_indices = @transform_4, window_bounds = array<i64: 32, 1>}]} {
    %c0_i32 = arith.constant 0 : i32
    %0 = arith.cmpi eq, %arg1, %c0_i32 : i32
    %1 = arith.extui %0 : i1 to i32
    %c0_i32_0 = arith.constant 0 : i32
    %2 = arith.cmpi ne, %1, %c0_i32_0 : i32
    scf.if %2 {
      %cst_24 = arith.constant -1.000000e+30 : f32
      %38 = vector.broadcast %cst_24 : f32 to vector<32x1xf32>
      %c0_25 = arith.constant 0 : index
      %c0_26 = arith.constant 0 : index
      %39 = vector.load %arg7[%c0_25, %c0_26] : memref<32x1xf32, #tpu.memory_space<vmem>>, vector<32x1xf32>
      tpu.vector_store %arg7[%c0_25, %c0_26], %38 {strides = array<i32>} : memref<32x1xf32, #tpu.memory_space<vmem>>, vector<32x1xf32>,
      %cst_27 = arith.constant 0.000000e+00 : f32
      %40 = vector.broadcast %cst_27 : f32 to vector<32x1xf32>
      %c0_28 = arith.constant 0 : index
      %c0_29 = arith.constant 0 : index
      %41 = vector.load %arg8[%c0_28, %c0_29] : memref<32x1xf32, #tpu.memory_space<vmem>>, vector<32x1xf32>
      tpu.vector_store %arg8[%c0_28, %c0_29], %40 {strides = array<i32>} : memref<32x1xf32, #tpu.memory_space<vmem>>, vector<32x1xf32>,
      %cst_30 = arith.constant 0.000000e+00 : f32
      %42 = vector.broadcast %cst_30 : f32 to vector<32x1xf32>
      %c0_31 = arith.constant 0 : index
      %c0_32 = arith.constant 0 : index
      %43 = vector.load %arg9[%c0_31, %c0_32] : memref<32x1xf32, #tpu.memory_space<vmem>>, vector<32x1xf32>
      tpu.vector_store %arg9[%c0_31, %c0_32], %42 {strides = array<i32>} : memref<32x1xf32, #tpu.memory_space<vmem>>, vector<32x1xf32>,
    } else {
    }
    %c0 = arith.constant 0 : index
    %c0_1 = arith.constant 0 : index
    %3 = vector.load %arg2[%c0, %c0_1] : memref<1x1xf32, #tpu.memory_space<vmem>>, vector<1x1xf32>
    %c0_2 = arith.constant 0 : index
    %c0_3 = arith.constant 0 : index
    %4 = vector.load %arg3[%c0_2, %c0_3] : memref<32x1xf32, #tpu.memory_space<vmem>>, vector<32x1xf32>
    %c0_4 = arith.constant 0 : index
    %c0_5 = arith.constant 0 : index
    %5 = vector.load %arg4[%c0_4, %c0_5] : memref<32x50xf32, #tpu.memory_space<vmem>>, vector<32x50xf32>
    %c0_6 = arith.constant 0 : index
    %c0_7 = arith.constant 0 : index
    %6 = vector.load %arg5[%c0_6, %c0_7] : memref<32x50xf32, #tpu.memory_space<vmem>>, vector<32x50xf32>
    %7 = vector.broadcast %4 : vector<32x1xf32> to vector<32x50xf32>
    %8 = arith.subf %7, %5 : vector<32x50xf32>
    %9 = arith.mulf %8, %8 : vector<32x50xf32>
    %10 = vector.broadcast %3 : vector<1x1xf32> to vector<32x50xf32>
    %11 = arith.mulf %9, %10 : vector<32x50xf32>
    %c0_8 = arith.constant 0 : index
    %c0_9 = arith.constant 0 : index
    %12 = vector.load %arg7[%c0_8, %c0_9] : memref<32x1xf32, #tpu.memory_space<vmem>>, vector<32x1xf32>
    %cst = arith.constant dense<0xFF800000> : vector<32xf32>
    %13 = vector.multi_reduction <maximumf>, %11, %cst [1] : vector<32x50xf32> to vector<32xf32>
    %14 = vector.shape_cast %13 : vector<32xf32> to vector<32x1xf32>
    %15 = arith.maximumf %12, %14 : vector<32x1xf32>
    %16 = arith.subf %12, %15 : vector<32x1xf32>
    %17 = math.exp %16 : vector<32x1xf32>
    %18 = vector.broadcast %15 : vector<32x1xf32> to vector<32x50xf32>
    %19 = arith.subf %11, %18 : vector<32x50xf32>
    %20 = math.exp %19 : vector<32x50xf32>
    %21 = arith.mulf %20, %6 : vector<32x50xf32>
    %c0_10 = arith.constant 0 : index
    %c0_11 = arith.constant 0 : index
    %22 = vector.load %arg8[%c0_10, %c0_11] : memref<32x1xf32, #tpu.memory_space<vmem>>, vector<32x1xf32>
    %23 = arith.mulf %17, %22 : vector<32x1xf32>
    %cst_12 = arith.constant dense<0.000000e+00> : vector<32xf32>
    %24 = vector.multi_reduction <add>, %20, %cst_12 [1] : vector<32x50xf32> to vector<32xf32>
    %25 = vector.shape_cast %24 : vector<32xf32> to vector<32x1xf32>
    %26 = arith.addf %23, %25 : vector<32x1xf32>
    %c0_13 = arith.constant 0 : index
    %c0_14 = arith.constant 0 : index
    %27 = vector.load %arg8[%c0_13, %c0_14] : memref<32x1xf32, #tpu.memory_space<vmem>>, vector<32x1xf32>
    tpu.vector_store %arg8[%c0_13, %c0_14], %26 {strides = array<i32>} : memref<32x1xf32, #tpu.memory_space<vmem>>, vector<32x1xf32>,
    %c0_15 = arith.constant 0 : index
    %c0_16 = arith.constant 0 : index
    %28 = vector.load %arg9[%c0_15, %c0_16] : memref<32x1xf32, #tpu.memory_space<vmem>>, vector<32x1xf32>
    %29 = arith.mulf %17, %28 : vector<32x1xf32>
    %cst_17 = arith.constant dense<0.000000e+00> : vector<32xf32>
    %30 = vector.multi_reduction <add>, %21, %cst_17 [1] : vector<32x50xf32> to vector<32xf32>
    %31 = vector.shape_cast %30 : vector<32xf32> to vector<32x1xf32>
    %32 = arith.addf %29, %31 : vector<32x1xf32>
    %c0_18 = arith.constant 0 : index
    %c0_19 = arith.constant 0 : index
    %33 = vector.load %arg9[%c0_18, %c0_19] : memref<32x1xf32, #tpu.memory_space<vmem>>, vector<32x1xf32>
    tpu.vector_store %arg9[%c0_18, %c0_19], %32 {strides = array<i32>} : memref<32x1xf32, #tpu.memory_space<vmem>>, vector<32x1xf32>,
    %c0_20 = arith.constant 0 : index
    %c0_21 = arith.constant 0 : index
    %34 = vector.load %arg7[%c0_20, %c0_21] : memref<32x1xf32, #tpu.memory_space<vmem>>, vector<32x1xf32>
    tpu.vector_store %arg7[%c0_20, %c0_21], %15 {strides = array<i32>} : memref<32x1xf32, #tpu.memory_space<vmem>>, vector<32x1xf32>,
    %c0_i32_22 = arith.constant 0 : i32
    %35 = arith.cmpi eq, %arg1, %c0_i32_22 : i32
    %36 = arith.extui %35 : i1 to i32
    %c0_i32_23 = arith.constant 0 : i32
    %37 = arith.cmpi ne, %36, %c0_i32_23 : i32
    scf.if %37 {
      %c0_24 = arith.constant 0 : index
      %c0_25 = arith.constant 0 : index
      %38 = vector.load %arg9[%c0_24, %c0_25] : memref<32x1xf32, #tpu.memory_space<vmem>>, vector<32x1xf32>
      %c0_26 = arith.constant 0 : index
      %c0_27 = arith.constant 0 : index
      %39 = vector.load %arg8[%c0_26, %c0_27] : memref<32x1xf32, #tpu.memory_space<vmem>>, vector<32x1xf32>
      %40 = arith.divf %38, %39 : vector<32x1xf32>
      %c0_28 = arith.constant 0 : index
      %c0_29 = arith.constant 0 : index
      %41 = vector.load %arg6[%c0_28, %c0_29] : memref<32x1xf32, #tpu.memory_space<vmem>>, vector<32x1xf32>
      tpu.vector_store %arg6[%c0_28, %c0_29], %40 {strides = array<i32>} : memref<32x1xf32, #tpu.memory_space<vmem>>, vector<32x1xf32>,
    } else {
    }
    return
  }
  func.func @transform_0(%arg0: i32, %arg1: i32) -> (i32, i32) {
    %c0_i32 = arith.constant 0 : i32
    %c0_i32_0 = arith.constant 0 : i32
    %c0_i32_1 = arith.constant 0 : i32
    return %c0_i32, %c0_i32_0 : i32, i32
  }
  func.func @transform_1(%arg0: i32, %arg1: i32) -> (i32, i32) {
    %c0_i32 = arith.constant 0 : i32
    %c0_i32_0 = arith.constant 0 : i32
    return %arg0, %c0_i32 : i32, i32
  }
  func.func @transform_2(%arg0: i32, %arg1: i32) -> (i32, i32) {
    %c0_i32 = arith.constant 0 : i32
    return %arg0, %arg1 : i32, i32
  }
  func.func @transform_3(%arg0: i32, %arg1: i32) -> (i32, i32) {
    %c0_i32 = arith.constant 0 : i32
    return %arg0, %arg1 : i32, i32
  }
  func.func @transform_4(%arg0: i32, %arg1: i32) -> (i32, i32) {
    %c0_i32 = arith.constant 0 : i32
    %c0_i32_0 = arith.constant 0 : i32
    return %arg0, %c0_i32 : i32, i32
  }
}

</mosaic_0001>

<bundles_post_ra>
// kernel: tpu_custom_call.1
= control target key start
LH: loop header
LB: loop body
LE: loop exit
PB: predicated region body
PF: predicated region fallthrough
CT: control target
= control target key end

     0   :  { %s1452_s0 = inlined_call_operand.<no memory space> [shape: f32[1,1], index: 0, kind: input, shape index: {}]   ;;  %s1453_s1 = inlined_call_operand.vmem [shape: f32[50,1], index: 1, kind: input, shape index: {}]   ;;  %s1454_s2 = inlined_call_operand.vmem [shape: f32[50,50], index: 2, kind: input, shape index: {}]   ;;  %s1455_s3 = inlined_call_operand.hbm [shape: f32[50,50], index: 3, kind: input, shape index: {}]   ;;  %s1456_s4 = inlined_call_operand.vmem [shape: f32[50,1], index: 4, kind: output, shape index: {}]  }
   0x1   :  { %v9_v0 = vstv %s1452_s0 }
   0x2   :  { %10 = vst [vmem:[#allocation5] sm:$0x1] %v9_v0 }
   0x3   :  { %11 = vsyncpa [#allocation7], 0 }
   0x4   :  { %13 = vsyncpa [#allocation7 + $0x1], 0  ;;  %s1200_s17 = smov 0   ;;  %s1202_s18 = smov 0  }
   0x5   :  { %s1204_s19 = smov 0   ;;  %s1206_s20 = smov 0  }
   0x6   :  { %s1208_s21 = smov 0   ;;  %s1210_s22 = smov 0  }
   0x7 LB: > { %s840_s0 = sadd.s32 4294967295, %s1132_s22   ;;  %s31_s23 = sadd.s32 1, %s1128_s21  ;;  %s1132_s22 = sphi %s1210_s22, %s19_s22   ;;  %s1128_s21 = sphi %s1208_s21, %s1466_s21   ;;  %s1124_s20 = sphi %s1206_s20, %s1465_s20   ;;  %s1120_s19 = sphi %s1204_s19, %s1464_s19   ;;  %s1116_s18 = sphi %s1202_s18, %s1463_s18   ;;  %s1112_s17 = sphi %s1200_s17, %s1462_s17  }
   0x8   : > { %p33_p0 = scmp.ge.s32.totalorder %s31_s23, 2  ;;  %s115_s24 = sadd.s32 1, %s1120_s19 }
   0x9   : > { %p122_p1 = scmp.ne.s32.totalorder %s1120_s19, %s1116_s18  ;;  %p123_p2 = scmp.eq.s32.totalorder %s1132_s22, 0 }
   0xa   : > { %s1468_s23 = smov (%p33_p0, %s31_s23), 0  ;;  %p128_p4 = scmp.ne.s32.totalorder %s1116_s18, %s1112_s17 }
   0xb   : > { %p124_p3 = por %p123_p2, %p122_p1  ;;  %s110_s25 = ssub.s32 %s1128_s21, %s1468_s23 }
   0xc   : > { %p129_p5 = scmp.eq.s32.totalorder %s840_s0, 0  ;;  %p113_p6 = scmp.eq.s32.totalorder %s110_s25, 0 }
   0xd   : > { %p152_p7 = scmp.eq.s32.totalorder %s840_s0, 1  ;;  %p843_p10 = scmp.ge.s32.totalorder %s1132_s22, 2 }
   0xe   : > { %p1239_p8 = por %p129_p5, %p128_p4 }
   0xf   : > { %s1244_s27 = scalar_select %p113_p6, %s1120_s19, %s115_s24  }
  0x10   : > { %p1246_p9 = por %p152_p7, %p122_p1  ;;  %177 = sbr.rel (%p843_p10) target bundleno = 53 (0x35), region = 20 }
  0x15   : > { %217 = sbr.rel (!%p124_p3) target bundleno = 53 (0x35), region = 32  ;;  %s218_s29 = sand.u32 (%p124_p3), 1, %s1120_s19  }
  0x16   : > { %s845_s30 = sshll.u32 (%p124_p3), %s1128_s21, 2  ;;  %s844_s5 = sshll.u32 (%p124_p3), %s218_s29, 5 }
  0x17   : > { %s224_s6 = ssub.s32 (%p124_p3), 7, %s845_s30  ;;  %s1256_s9 = scalar_lea.sflag (%p124_p3), [#allocation7], %s218_s29 }
  0x18   : > { %p225_p11 = scmp.lt.s32.totalorder (%p124_p3), %s224_s6, 4  ;;  %s222_s10 = scalar_lea.vmem (%p124_p3), [#allocation6], %s844_s5 }
  0x1a   : > { %s1470_s6 = smov (!%p225_p11, %s224_s6), 4 }
  0x1b   : > { %s1253_s7 = sshll.u32 %s1470_s6, 7 }
  0x1c   : > { %s229_s8 = ssub.s32 512, %s1253_s7 }
  0x1d   : > { %230 = vsyncadd %s1256_s9, %s229_s8  ;;  %p847_p12 = scmp.ne.s32.totalorder %s1253_s7, 0  ;;  %s876_s11 = sshll.u32 %s1128_s21, 9 }
  0x1e   : > { %s1264_s14 = scalar_lea.hbm %s1455_s3, %s876_s11  ;;  %s236_s15 = sshll.u32 %s222_s10, 4  ;;  %s1266_s15 = int_to_ptr.vmem [resolvable:$true] %s236_s15 }
  0x1f   : > { %s1024_s16 = scalar_lea.hbm %s1264_s14, %s1253_s7  ;;  %s1028_s24 = scalar_lea.hbm %s1455_s3, 896 }
  0x20   : > { %p1025_p13 = scmp.ne.s32.totalorder %s1264_s14, %s1024_s16  ;;  %p1030_p2 = scmp.lt.s32.totalorder %s1028_s24, %s1024_s16 }
  0x22   : > { %p1026_p0 = pnand %p1025_p13, %p847_p12 }
  0x24   : > { %p1027_p1 = pneg %p1026_p0 }
  0x26   : > { %p1032_p3 = pnand %p1030_p2, %p1027_p1 }
  0x28   : > { %1035 = shalt.err (!%p1032_p3)
}
  0x29   : > { %s1036_s25 = scalar_lea.vmem %s1266_s15, %s1253_s7  ;;  %s1166_s29 = smov [#allocation6]  }
  0x2a   : > { %p1037_p4 = scmp.ne.s32.totalorder %s1266_s15, %s1036_s25  ;;  %s1040_s30 = sshll.u32 %s1166_s29, 4  ;;  %s1041_s30 = int_to_ptr.vmem [resolvable:$false] %s1040_s30 }
  0x2b   : > { %s1042_s5 = scalar_lea.vmem %s1041_s30, 1024  ;;  %p1043_p7 = scmp.lt.s32.totalorder %s1266_s15, %s1041_s30 }
  0x2c   : > { %p1038_p5 = pnand %p1037_p4, %p847_p12  ;;  %p1044_p10 = scmp.lt.s32.totalorder %s1042_s5, %s1036_s25 }
  0x2e   : > { %p1039_p6 = pneg %p1038_p5  ;;  %p1045_p11 = por %p1044_p10, %p1043_p7 }
  0x30   : > { %p1046_p13 = pnand %p1045_p11, %p1039_p6 }
  0x32   : > { %1049 = shalt.err (!%p1046_p13)
}
  0x33   : > { %s1167_s6 = smov 128   ;;  %s1168_s8 = smov 8  }
  0x34   : > { %242 = dma.hbm_to_vmem [thread:$0]  (%p847_p12), %s1264_s14, %s1253_s7, %s1266_s15, %s1256_s9, %s1167_s6, %s1167_s6, %s1168_s8  }
  0x35 PF: > { %p851_p0 = scmp.ge.s32.totalorder %s1132_s22, 1  ;;  %p244_p1 = scmp.lt.s32.totalorder %s1132_s22, 3 }
  0x37   : > { %p245_p2 = pnand %p851_p0, %p244_p1 }
  0x38   : > { %s250_s10 = sand.u32 (!%p245_p2), 1, %s1116_s18  }
  0x39   : > { %248 = sbr.rel (%p245_p2) target bundleno = 698 (0x2ba), region = 36  ;;  %s1291_s11 = sshll.u32 (!%p245_p2), %s250_s10, 5 }
  0x3a   : > { %s251_s12 = scalar_lea.sflag (!%p245_p2), [#allocation7], %s250_s10  ;;  %s1294_s13 = scalar_lea.vmem (!%p245_p2), [#allocation6], %s1291_s11 }
  0x3e   : > { %1107 = dma.done.wait (%p1239_p8), %s251_s12, 512  }
  0x3f   : > { %1109 = vsyncadd (%p1239_p8), %s251_s12, 4294966784  ;;  %s1301_s7 = sshll.u32 %s1124_s20, 2  ;;  %v1169_v1 = vmov 0   ;;  %v858_v6 = vld [vmem:[#allocation5] ss:$0 sm:$0xff]  ;;  %vm344_vm0 = vcmask 7168  }
  0x40   : > { %999 = vset.pattern.permute.xlu1 %v1169_v1  ;;  %998 = vset.pattern.permute.xlu0 %v1169_v1  ;;  %p304_p12 = scmp.lt.s32.totalorder %s1301_s7, 6  ;;  %v1170_v7 = vmov -1e+30   ;;  %vm415_vm1 = vcmask 408576   ;;  %v1171_v33 = vmov 0.0   ;;  %s1378_s25 = scalar_lea.vmem [#allocation8], %s1291_s11  }
  0x41   : > { %346 = vst.msk [vmem:[#allocation2 + $0x8] sm:$0xff] %vm344_vm0, %v1170_v7  ;;  %345 = vst.msk [vmem:[#allocation2] sm:$0xff] %vm344_vm0, %v1170_v7  ;;  %s572_s29 = ssub.s32 (%p1246_p9), 7, %s1301_s7  ;;  %s877_s30 = sshll.u32 (%p1246_p9), %s1124_s20, 5 }
  0x42   : > { %s305_s9 = scalar_select %p304_p12, %s1301_s7, 6  ;;  %347 = vst.msk [vmem:[#allocation2 + $0x10] sm:$0xff] %vm344_vm0, %v1170_v7  ;;  %348 = vst.msk [vmem:[#allocation2 + $0x18] sm:$0xff] %vm344_vm0, %v1170_v7 }
  0x43   : > { %349 = vst.msk [vmem:[#allocation3] sm:$0xff] %vm344_vm0, %v1171_v33  ;;  %350 = vst.msk [vmem:[#allocation3 + $0x8] sm:$0xff] %vm344_vm0, %v1171_v33  ;;  %p573_p8 = scmp.lt.s32.totalorder (%p1246_p9), %s572_s29, 4  ;;  %s1395_s8 = scalar_lea.vmem (%p1246_p9), %s1456_s4, %s877_s30  }
  0x44   : > { %s855_s14 = sshll.u32 %s305_s9, 3  ;;  %351 = vst.msk [vmem:[#allocation3 + $0x10] sm:$0xff] %vm344_vm0, %v1171_v33  ;;  %352 = vst.msk [vmem:[#allocation3 + $0x18] sm:$0xff] %vm344_vm0, %v1171_v33 }
  0x45   : > { %s307_s17 = scalar_lea.vmem %s1453_s1, %s855_s14  ;;  %s324_s24 = scalar_lea.vmem %s1454_s2, %s855_s14  ;;  %353 = vst.msk [vmem:[#allocation4] sm:$0xff] %vm344_vm0, %v1171_v33  ;;  %354 = vst.msk [vmem:[#allocation4 + $0x8] sm:$0xff] %vm344_vm0, %v1171_v33 }
  0x46   : > { %v360_v2 = vld [vmem:[%s307_s17 + $0x10] sm:$0xff]  ;;  %v358_v3 = vld [vmem:[%s307_s17] sm:$0xff]  ;;  %v361_v4 = vld [vmem:[%s307_s17 + $0x18] sm:$0xff]  ;;  %355 = vst.msk [vmem:[#allocation4 + $0x10] sm:$0xff] %vm344_vm0, %v1171_v33 }
  0x47   : > { %382 = vperm.xlu1 %999, %v360_v2   ;;  %372 = vperm.xlu0 %998, %v358_v3   ;;  %v359_v5 = vld [vmem:[%s307_s17 + $0x8] sm:$0xff]  ;;  %v364_v8 = vld [vmem:[%s324_s24 + $0x10] sm:$0xff]  ;;  %v362_v10 = vld [vmem:[%s324_s24] sm:$0xff]  ;;  %356 = vst.msk [vmem:[#allocation4 + $0x18] sm:$0xff] %vm344_vm0, %v1171_v33 }
  0x48   : > { %v365_v12 = vld [vmem:[%s324_s24 + $0x18] sm:$0xff]  ;;  %v363_v13 = vld [vmem:[%s324_s24 + $0x8] sm:$0xff]  ;;  %v1329_v35 = vld [vmem:[#allocation2] sm:$0xff] }
  0x49   : > { %v1327_v34 = vld [vmem:[#allocation2 + $0x8] sm:$0xff]  ;;  %v1337_v40 = vld [vmem:[#allocation2 + $0x10] sm:$0xff]  ;;  %v1339_v41 = vld [vmem:[#allocation2 + $0x18] sm:$0xff] }
  0x4a   : > { %v366_v2 = vld [vmem:[%s1294_s13] sm:$0xff]  ;;  %v367_v3 = vld [vmem:[%s1294_s13 + $0x8] sm:$0xff] }
  0x4b   : > { %387 = vperm.xlu1 %999, %v361_v4   ;;  %377 = vperm.xlu0 %998, %v359_v5  }
  0x4f   : > { %404 = vperm.xlu0 %998, %v858_v6  }
  0xc2   : > { %v383_v9 = vpop.permute.xlu1 %382  ;;  %v373_v11 = vpop.permute.xlu0 %372 }
  0xc3   : > { %v392_v14 = vsub.f32 %v383_v9, %v364_v8  ;;  %v390_v15 = vsub.f32 %v373_v11, %v362_v10  ;;  %v368_v10 = vld [vmem:[%s1294_s13 + $0x10] sm:$0xff]  ;;  %v369_v11 = vld [vmem:[%s1294_s13 + $0x18] sm:$0xff] }
  0xc5   : > { %v396_v20 = vmul.f32 %v392_v14, %v392_v14  ;;  %v394_v21 = vmul.f32 %v390_v15, %v390_v15 }
  0xc6   : > { %v388_v16 = vpop.permute.xlu1 %387  ;;  %v378_v17 = vpop.permute.xlu0 %377 }
  0xc7   : > { %v393_v18 = vsub.f32 %v388_v16, %v365_v12  ;;  %v391_v19 = vsub.f32 %v378_v17, %v363_v13 }
  0xc9   : > { %v397_v22 = vmul.f32 %v393_v18, %v393_v18  ;;  %v395_v23 = vmul.f32 %v391_v19, %v391_v19 }
  0xca   : > { %v405_v24 = vpop.permute.xlu0 %404 }
  0xcb   : > { %v408_v25 = vmul.f32 %v405_v24, %v395_v23  ;;  %v407_v26 = vmul.f32 %v405_v24, %v394_v21  ;;  %v409_v29 = vmul.f32 %v405_v24, %v396_v20  ;;  %v410_v30 = vmul.f32 %v405_v24, %v397_v22  ;;  %v481_v23 = vld [vmem:[#allocation3 + $0x8] sm:$0xff] }
  0xcd   : > { %v419_v27 = vsel %vm415_vm1, %v408_v25, -inf  ;;  %v416_v28 = vsel %vm415_vm1, %v407_v26, -inf  ;;  %v422_v31 = vsel %vm415_vm1, %v409_v29, -inf  ;;  %v425_v32 = vsel %vm415_vm1, %v410_v30, -inf }
  0xce   : > { %420 = vmax.xlane.f32.xlu0 %v419_v27  ;;  %417 = vmax.xlane.f32.xlu1 %v416_v28 }
  0xd2   : > { %423 = vmax.xlane.f32.xlu0 %v422_v31  ;;  %426 = vmax.xlane.f32.xlu1 %v425_v32 }
 0x157   : > { %v421_v36 = vpop.xlane.xlu0 %420  ;;  %v418_v37 = vpop.xlane.xlu1 %417 }
 0x158   : > { %v1332_v38 = vmax.f32 %v1327_v34, %v421_v36  ;;  %v1335_v39 = vmax.f32 %v1329_v35, %v418_v37 }
 0x15a   : > { %v433_v42 = vsub.f32 %v1327_v34, %v1332_v38  ;;  %538 = vst.msk [vmem:[#allocation2 + $0x8] sm:$0xff] %vm344_vm0, %v1332_v38  ;;  %v432_v43 = vsub.f32 %v1329_v35, %v1335_v39  ;;  %537 = vst.msk [vmem:[#allocation2] sm:$0xff] %vm344_vm0, %v1335_v39  ;;  %451 = vperm.xlu1 %999, %v1332_v38   ;;  %446 = vperm.xlu0 %998, %v1335_v39   ;;  %v483_v34 = vld [vmem:[#allocation3 + $0x18] sm:$0xff]  ;;  %v509_v39 = vld [vmem:[#allocation4] sm:$0xff] }
 0x15b   : > { %v424_v44 = vpop.xlane.xlu0 %423  ;;  %v427_v45 = vpop.xlane.xlu1 %426 }
 0x15c   : > { %v430_v46 = vmax.f32 %v1337_v40, %v424_v44  ;;  %v431_v47 = vmax.f32 %v1339_v41, %v427_v45  ;;  %v438_v18 = vmul.f32 1.442695, %v433_v42  ;;  %v436_v19 = vmul.f32 1.442695, %v432_v43  ;;  %v510_v42 = vld [vmem:[#allocation4 + $0x8] sm:$0xff] }
 0x15e   : > { %v434_v48 = vsub.f32 %v1337_v40, %v430_v46  ;;  %539 = vst.msk [vmem:[#allocation2 + $0x10] sm:$0xff] %vm344_vm0, %v430_v46  ;;  %v435_v49 = vsub.f32 %v1339_v41, %v431_v47  ;;  %540 = vst.msk [vmem:[#allocation2 + $0x18] sm:$0xff] %vm344_vm0, %v431_v47  ;;  %456 = vperm.xlu1 %999, %v430_v46   ;;  %461 = vperm.xlu0 %998, %v431_v47   ;;  %v511_v47 = vld [vmem:[#allocation4 + $0x10] sm:$0xff] }
 0x160   : > { %v440_v20 = vmul.f32 1.442695, %v434_v48  ;;  %v442_v21 = vmul.f32 1.442695, %v435_v49 }
 0x1d5   : > { %v452_v50 = vpop.permute.xlu1 %451  ;;  %v447_v51 = vpop.permute.xlu0 %446 }
 0x1d6   : > { %v465_v52 = vsub.f32 %v408_v25, %v452_v50  ;;  %v464_v53 = vsub.f32 %v407_v26, %v447_v51  ;;  %v480_v25 = vld [vmem:[#allocation3] sm:$0xff]  ;;  %v512_v50 = vld [vmem:[#allocation4 + $0x18] sm:$0xff] }
 0x1d8   : > { %v470_v54 = vmul.f32 1.442695, %v465_v52  ;;  %v468_v55 = vmul.f32 1.442695, %v464_v53 }
 0x1d9   : > { %v457_v56 = vpop.permute.xlu1 %456  ;;  %v462_v57 = vpop.permute.xlu0 %461 }
 0x1da   : > { %1000 = vpow2.f32 %v470_v54  ;;  %v466_v58 = vsub.f32 %v409_v29, %v457_v56  ;;  %v467_v59 = vsub.f32 %v410_v30, %v462_v57  ;;  %v482_v30 = vld [vmem:[#allocation3 + $0x10] sm:$0xff] }
 0x1db   : > { %1002 = vpow2.f32 %v468_v55 }
 0x1dc   : > { %v472_v60 = vmul.f32 1.442695, %v466_v58  ;;  %v474_v61 = vmul.f32 1.442695, %v467_v59 }
 0x1de   : > { %1004 = vpow2.f32 %v472_v60 }
 0x1df   : > { %1006 = vpow2.f32 %v474_v61 }
 0x1e0   : > { %1008 = vpow2.f32 %v438_v18 }
 0x1e1   : > { %1010 = vpow2.f32 %v436_v19 }
 0x1e2   : > { %1012 = vpow2.f32 %v440_v20 }
 0x1e3   : > { %1014 = vpow2.f32 %v442_v21 }
 0x1e7   : > { %v1001_v62 = vpop.eup %1000 }
 0x1e8   : > { %v1003_v63 = vpop.eup %1002  ;;  %v491_v0 = vsel %vm415_vm1, %v1001_v62, 0.0  ;;  %v477_v9 = vmul.f32 %v1001_v62, %v367_v3 }
 0x1e9   : > { %492 = vadd.xlane.f32.xlu0 %v491_v0  ;;  %v488_v1 = vsel %vm415_vm1, %v1003_v63, 0.0  ;;  %v476_v7 = vmul.f32 %v1003_v63, %v366_v2 }
 0x1ea   : > { %489 = vadd.xlane.f32.xlu1 %v488_v1  ;;  %v520_v14 = vsel %vm415_vm1, %v477_v9, 0.0 }
 0x1eb   : > { %v1005_v4 = vpop.eup %1004  ;;  %v517_v12 = vsel %vm415_vm1, %v476_v7, 0.0 }
 0x1ec   : > { %v1007_v5 = vpop.eup %1006  ;;  %v494_v6 = vsel %vm415_vm1, %v1005_v4, 0.0  ;;  %v478_v13 = vmul.f32 %v1005_v4, %v368_v10 }
 0x1ed   : > { %495 = vadd.xlane.f32.xlu0 %v494_v6  ;;  %v497_v8 = vsel %vm415_vm1, %v1007_v5, 0.0  ;;  %v479_v15 = vmul.f32 %v1007_v5, %v369_v11  ;;  %v1009_v22 = vpop.eup %1008 }
 0x1ee   : > { %498 = vadd.xlane.f32.xlu1 %v497_v8  ;;  %v523_v16 = vsel %vm415_vm1, %v478_v13, 0.0  ;;  %v1011_v24 = vpop.eup %1010  ;;  %v485_v26 = vmul.f32 %v1009_v22, %v481_v23  ;;  %v514_v45 = vmul.f32 %v1009_v22, %v510_v42 }
 0x1ef   : > { %v526_v17 = vsel %vm415_vm1, %v479_v15, 0.0  ;;  %v1013_v27 = vpop.eup %1012  ;;  %v484_v28 = vmul.f32 %v1011_v24, %v480_v25  ;;  %v513_v44 = vmul.f32 %v1011_v24, %v509_v39 }
 0x1f0   : > { %v1015_v31 = vpop.eup %1014  ;;  %v486_v36 = vmul.f32 %v1013_v27, %v482_v30  ;;  %v515_v54 = vmul.f32 %v1013_v27, %v511_v47 }
 0x1f1   : > { %518 = vadd.xlane.f32.xlu0 %v517_v12  ;;  %v487_v37 = vmul.f32 %v1015_v31, %v483_v34  ;;  %v516_v55 = vmul.f32 %v1015_v31, %v512_v50 }
 0x1f2   : > { %521 = vadd.xlane.f32.xlu1 %v520_v14 }
 0x1f5   : > { %524 = vadd.xlane.f32.xlu0 %v523_v16 }
 0x1f6   : > { %527 = vadd.xlane.f32.xlu1 %v526_v17 }
 0x272   : > { %v493_v29 = vpop.xlane.xlu0 %492 }
 0x273   : > { %v490_v32 = vpop.xlane.xlu1 %489  ;;  %v501_v33 = vadd.f32 %v493_v29, %v485_v26 }
 0x274   : > { %v500_v35 = vadd.f32 %v490_v32, %v484_v28 }
 0x275   : > { %506 = vst.msk [vmem:[#allocation3 + $0x8] sm:$0xff] %vm344_vm0, %v501_v33 }
 0x276   : > { %505 = vst.msk [vmem:[#allocation3] sm:$0xff] %vm344_vm0, %v500_v35  ;;  %v496_v38 = vpop.xlane.xlu0 %495 }
 0x277   : > { %v499_v40 = vpop.xlane.xlu1 %498  ;;  %v502_v41 = vadd.f32 %v496_v38, %v486_v36 }
 0x278   : > { %v503_v43 = vadd.f32 %v499_v40, %v487_v37 }
 0x279   : > { %507 = vst.msk [vmem:[#allocation3 + $0x10] sm:$0xff] %vm344_vm0, %v502_v41 }
 0x27a   : > { %508 = vst.msk [vmem:[#allocation3 + $0x18] sm:$0xff] %vm344_vm0, %v503_v43  ;;  %v519_v46 = vpop.xlane.xlu0 %518 }
 0x27b   : > { %v522_v48 = vpop.xlane.xlu1 %521  ;;  %v529_v49 = vadd.f32 %v519_v46, %v513_v44 }
 0x27c   : > { %v549_v51 = vld [vmem:[#allocation3 + $0x8] sm:$0xff]  ;;  %v530_v52 = vadd.f32 %v522_v48, %v514_v45 }
 0x27d   : > { %v548_v53 = vld [vmem:[#allocation3] sm:$0xff]  ;;  %1016 = vrcp.f32 %v549_v51  ;;  %533 = vst.msk [vmem:[#allocation4] sm:$0xff] %vm344_vm0, %v529_v49 }
 0x27e   : > { %1018 = vrcp.f32 %v548_v53  ;;  %534 = vst.msk [vmem:[#allocation4 + $0x8] sm:$0xff] %vm344_vm0, %v530_v52  ;;  %v525_v56 = vpop.xlane.xlu0 %524 }
 0x27f   : > { %v528_v57 = vpop.xlane.xlu1 %527  ;;  %v531_v58 = vadd.f32 %v525_v56, %v515_v54 }
 0x280   : > { %v550_v59 = vld [vmem:[#allocation3 + $0x10] sm:$0xff]  ;;  %v532_v60 = vadd.f32 %v528_v57, %v516_v55 }
 0x281   : > { %v551_v61 = vld [vmem:[#allocation3 + $0x18] sm:$0xff]  ;;  %1020 = vrcp.f32 %v550_v59  ;;  %535 = vst.msk [vmem:[#allocation4 + $0x10] sm:$0xff] %vm344_vm0, %v531_v58 }
 0x282   : > { %1022 = vrcp.f32 %v551_v61  ;;  %536 = vst.msk [vmem:[#allocation4 + $0x18] sm:$0xff] %vm344_vm0, %v532_v60 }
 0x284   : > { %v544_v2 = vld [vmem:[#allocation4] sm:$0xff] }
 0x285   : > { %v545_v63 = vld [vmem:[#allocation4 + $0x8] sm:$0xff] }
 0x288   : > { %v546_v5 = vld [vmem:[#allocation4 + $0x10] sm:$0xff] }
 0x289   : > { %v547_v7 = vld [vmem:[#allocation4 + $0x18] sm:$0xff] }
 0x28a   : > { %v1017_v62 = vpop.eup %1016 }
 0x28b   : > { %v1019_v0 = vpop.eup %1018  ;;  %v555_v1 = vmul.f32 %v1017_v62, %v545_v63 }
 0x28c   : > { %v553_v3 = vmul.f32 %v1019_v0, %v544_v2 }
 0x28d   : > { %561 = vst.msk [vmem:[%s1378_s25 + $0x8] sm:$0xff] %vm344_vm0, %v555_v1 }
 0x28e   : > { %v1021_v4 = vpop.eup %1020  ;;  %560 = vst.msk [vmem:[%s1378_s25] sm:$0xff] %vm344_vm0, %v553_v3  ;;  %570 = sbr.rel (!%p1246_p9) target bundleno = 698 (0x2ba), region = 52 }
 0x28f   : > { %v1023_v6 = vpop.eup %1022  ;;  %v557_v8 = vmul.f32 %v1021_v4, %v546_v5 }
 0x290   : > { %v559_v9 = vmul.f32 %v1023_v6, %v547_v7 }
 0x291   : > { %562 = vst.msk [vmem:[%s1378_s25 + $0x10] sm:$0xff] %vm344_vm0, %v557_v8 }
 0x292   : > { %563 = vst.msk [vmem:[%s1378_s25 + $0x18] sm:$0xff] %vm344_vm0, %v559_v9 }
 0x293   : > { %s1472_s29 = smov (!%p573_p8, %s572_s29), 4 }
 0x294   : > { %s861_s10 = sshll.u32 %s1472_s29, 7 }
 0x295   : > { %p864_p3 = scmp.eq.s32.totalorder %s861_s10, 0 }
 0x296   : > { %s1401_s11 = sshrl.u32 (!%p864_p3), %s1472_s29, 2 }
 0x297   : > { %581 = sbr.rel (%p864_p3) target bundleno = 698 (0x2ba), region = 56  ;;  %p865_p9 = scmp.le.s32.totalorder (!%p864_p3), %s1401_s11, 0 }
 0x29c   : > { %773 = sbr.rel (%p865_p9) target bundleno = 681 (0x2a9), region = 144  ;;  %s1459_s20 = smov (!%p865_p9), %s1395_s8 }
 0x29d   : > { %s1460_s28 = smov (!%p865_p9), %s1378_s25  ;;  %s1410_s12 = smov (!%p865_p9), 0  }
 0x29e   : > { %s1146_s13 = smov (!%p865_p9), 0  }
 0x2a1 LB: >> { %v650_v10 = vld [vmem:[%s1140_s28] sm:$0xff]  ;;  %v652_v11 = vld [vmem:[%s1140_s28 + $0x8] sm:$0xff]  ;;  %v654_v12 = vld [vmem:[%s1140_s28 + $0x10] sm:$0xff]  ;;  %s658_s7 = sadd.s32 1, %s1144_s12  ;;  %s644_s13 = sadd.s32 1, %s1148_s13   ;;  %s1148_s13 = sphi %s1146_s13, %s644_s13   ;;  %s1144_s12 = sphi %s1410_s12, %s1461_s12   ;;  %s1140_s28 = sphi %s1460_s28, %s663_s28   ;;  %s1136_s20 = sphi %s1459_s20, %s664_s20  }
 0x2a2   : >> { %651 = vst [vmem:[%s1136_s20] sm:$0xff] %v650_v10  ;;  %653 = vst [vmem:[%s1136_s20 + $0x8] sm:$0xff] %v652_v11  ;;  %v656_v13 = vld [vmem:[%s1140_s28 + $0x18] sm:$0xff]  ;;  %p659_p4 = scmp.ge.s32.totalorder %s658_s7, %s1401_s11  ;;  %p643_p5 = scmp.ge.s32.totalorder %s644_s13, %s1401_s11 }
 0x2a3   : >> { %655 = vst [vmem:[%s1136_s20 + $0x10] sm:$0xff] %v654_v12  ;;  %657 = vst [vmem:[%s1136_s20 + $0x18] sm:$0xff] %v656_v13 }
 0x2a4   : >> { %s1474_s7 = smov (%p659_p4, %s658_s7), 0  ;;  %646 = sbr.rel (!%p643_p5) target bundleno = 673 (0x2a1), region = 150 }
 0x2a5   : >> { %s866_s9 = sshll.u32 %s1474_s7, 5  ;;  %s1461_s12 = smov %s1474_s7 }
 0x2a6   : >> { %s663_s28 = scalar_lea.vmem %s1378_s25, %s866_s9 [#allocation8]   ;;  %s664_s20 = scalar_lea.vmem %s1395_s8, %s866_s9  }
 0x2a9 PF: > { %s1426_s14 = sand.u32 3, %s1472_s29   ;;  %s878_s15 = sshll.u32 %s1401_s11, 5 }
 0x2aa   : > { %s669_s16 = scalar_lea.vmem %s1378_s25, %s878_s15 [#allocation8]   ;;  %s671_s17 = scalar_lea.vmem %s1395_s8, %s878_s15  }
 0x2ab   : > { %p871_p6 = scmp.le.s32.totalorder %s1426_s14, 0 }
 0x2ac   : > { %s1150_s26 = smov (!%p871_p6), %s671_s17   ;;  %s1154_s0 = smov (!%p871_p6), %s669_s16  }
 0x2ad   : > { %787 = sbr.rel (%p871_p6) target bundleno = 698 (0x2ba), region = 155  ;;  %s1158_s24 = smov (!%p871_p6), 0  }
 0x2ae   : > { %s1162_s30 = smov (!%p871_p6), 0  }
 0x2b2 LB: >> { %v681_v14 = vld [vmem:[%s1156_s0] sm:$0xff]  ;;  %s683_s29 = sadd.s32 1, %s1160_s24  ;;  %s675_s30 = sadd.s32 1, %s1164_s30   ;;  %s1164_s30 = sphi %s1162_s30, %s675_s30   ;;  %s1160_s24 = sphi %s1158_s24, %s1159_s24   ;;  %s1156_s0 = sphi %s1154_s0, %s688_s0   ;;  %s1152_s26 = sphi %s1150_s26, %s689_s26  }
 0x2b3   : >> { %682 = vst [vmem:[%s1152_s26] sm:$0xff] %v681_v14  ;;  %p684_p7 = scmp.ge.s32.totalorder %s683_s29, %s1426_s14  ;;  %p674_p10 = scmp.ge.s32.totalorder %s675_s30, %s1426_s14 }
 0x2b5   : >> { %s1476_s29 = smov (%p684_p7, %s683_s29), 0  ;;  %677 = sbr.rel (!%p674_p10) target bundleno = 690 (0x2b2), region = 161 }
 0x2b6   : >> { %s872_s25 = sshll.u32 %s1476_s29, 3  ;;  %s1159_s24 = smov %s1476_s29  }
 0x2b7   : >> { %s688_s0 = scalar_lea.vmem %s669_s16, %s872_s25 [#allocation8]   ;;  %s689_s26 = scalar_lea.vmem %s671_s17, %s872_s25  }
 0x2ba PF: > { %s19_s22 = sadd.s32 1, %s1132_s22   ;;  %s1462_s17 = smov %s1116_s18 }
 0x2bb   : > { %p16_p11 = scmp.ge.s32.totalorder %s19_s22, 4   ;;  %s1463_s18 = smov %s1120_s19 }
 0x2bc   : > { %s1464_s19 = smov %s1244_s27  ;;  %s1465_s20 = smov %s1128_s21 }
 0x2bd   : > { %s1466_s21 = smov %s1468_s23  ;;  %18 = sbr.rel (!%p16_p11) target bundleno = 7 (0x7), region = 172 }
 0x2c2   :  { %705 = vsyncpa [#allocation7], 1 }
 0x2c3   :  { %707 = vsyncpa [#allocation7 + $0x1], 1 }

</bundles_post_ra>
